<compile_context>
chip_gen: v7x
topology: tpu7x:2x2x1
jax: 0.10.0
libtpu: 0.0.40
codegen_flags: <defaults>
</compile_context>

<pallas_src>
import functools

import jax
import jax.numpy as jnp
from jax import lax
from jax.experimental import pallas as pl
from jax.experimental.pallas import tpu as pltpu


# --------------------------------------------------------------------------------------
# Hardware-aware sizing helpers
# --------------------------------------------------------------------------------------
@functools.lru_cache(maxsize=None)
def _tpu_vmem_capacity():
    try:
        return int(getattr(pltpu.get_tpu_info(), "vmem_capacity_bytes", 64 << 20))
    except Exception:
        return 64 << 20  # conservative default (v7x-sized)


def _vmem_budget():
    """Per-grid-step working-set target (counts double buffers + scratch)."""
    cap = _tpu_vmem_capacity()
    return max(4 << 20, min(16 << 20, cap // 8))   # v5e/v6e: 16 MiB, v7x: 8 MiB


def _vmem_limit():
    cap = _tpu_vmem_capacity()
    return int(min(cap // 2, 64 << 20))            # v5e/v6e: 64 MiB, v7x: 32 MiB


def _round_up(x, m):
    return (x + m - 1) // m * m


def _pick_tiles(k, c_out_p, hw, budget):
    """Choose (TK, K_pad, TM, HW_pad).  Honest per-step VMEM accounting."""
    hw128 = _round_up(hw, 128)

    def step_bytes(tk, tm):
        return (2 * tk * tm * 2            # patches block, bf16, double-buffered
                + 2 * c_out_p * tk * 2     # weight block, bf16, double-buffered
                + 2 * c_out_p * tm * 2     # conv (bf16) output block, double-buffered
                + c_out_p * tm * 4         # f32 accumulator scratch (single)
                + 2 * c_out_p * 2 * 4)     # stats output block, double-buffered

    def best_tm(tk):
        tm = min(hw128, 2048)
        while tm > 128 and step_bytes(tk, tm) > budget:
            tm -= 128
        return tm

    # Prefer un-tiled K; add a K reduction axis only when it buys back TM >= 512.
    tk, tm = k, best_tm(k)
    if tm < 512 and k > 512:
        tm2 = best_tm(512)
        if tm2 > tm:
            tk, tm = 512, tm2
    k_pad = k if tk == k else _round_up(k, tk)

    # Refine TM (within [TM/2, TM], multiples of 128) to minimize HW zero-padding.
    best_t, best_pad = tm, _round_up(hw, tm)
    t = tm - 128
    while t >= max(128, tm // 2):
        p = _round_up(hw, t)
        if p < best_pad:
            best_t, best_pad = t, p
        t -= 128
    tm = best_t
    hw_pad = _round_up(hw, tm)
    return tk, k_pad, tm, hw_pad


# --------------------------------------------------------------------------------------
# Kernels
# --------------------------------------------------------------------------------------
def _conv_stats_kernel(p_ref, w_ref, conv_ref, stats_ref, acc_ref):
    """One (n, m, k) step: acc += W_k @ patches_k; on last k store bf16 conv + f32 stats."""
    k = pl.program_id(2)

    @pl.when(k == 0)
    def _init():
        acc_ref[...] = jnp.zeros_like(acc_ref)

    acc_ref[...] += jnp.dot(w_ref[...], p_ref[...],
                            preferred_element_type=jnp.float32)

    @pl.when(k == pl.num_programs(2) - 1)
    def _finalize():
        acc = acc_ref[...]                                    # (C_out_p, TM) f32
        conv_ref[...] = acc.astype(conv_ref.dtype)            # bf16 intermediate
        stats_ref[:, 0:1] = jnp.sum(acc, axis=1, keepdims=True)
        stats_ref[:, 1:2] = jnp.sum(acc * acc, axis=1, keepdims=True)


def _bn_relu_kernel(conv_ref, scale_ref, shift_ref, o_ref):
    """One (n, m) tile: y = relu(conv * scale + shift)."""
    conv = conv_ref[...].astype(jnp.float32)
    o_ref[...] = jnp.maximum(conv * scale_ref[...] + shift_ref[...], 0.0)


# --------------------------------------------------------------------------------------
# Wrapper
# --------------------------------------------------------------------------------------
@functools.partial(jax.jit, static_argnames=("stride", "pad", "eps"))
def conv_bn_relu(x_nchw, w_oihw, b, gamma, beta, *, stride, pad, eps=1e-5):
    """Forward pass of ConvBNReLU.  Input/output in NCHW (PyTorch convention)."""
    N, C_in, H, W = x_nchw.shape
    C_out, _, KH, KW = w_oihw.shape
    H_out = (H + 2 * pad - KH) // stride + 1
    W_out = (W + 2 * pad - KW) // stride + 1
    HW = H_out * W_out
    K = KH * KW * C_in
    # Conv bias cancels exactly in train-mode BatchNorm (per-channel constant in conv-mean).
    # TODO(synk): if this is ever reused with eval-mode (running-stats) BN, reinstate `b`.
    del b

    C_out_p = _round_up(C_out, 8)
    TK, K_pad, TM, HW_pad = _pick_tiles(K, C_out_p, HW, _vmem_budget())
    num_m = HW_pad // TM
    num_k = K_pad // TK

    # ---- im2col, entirely in bf16, channel-major (no NHWC round trip) ----
    x_bf = x_nchw.astype(jnp.bfloat16)
    x_padded = jnp.pad(x_bf, ((0, 0), (0, 0), (pad, pad), (pad, pad)))
    h_lim = (H_out - 1) * stride + 1
    w_lim = (W_out - 1) * stride + 1
    pieces = [x_padded[:, :, kh:kh + h_lim:stride, kw:kw + w_lim:stride]
              for kh in range(KH) for kw in range(KW)]
    patches = jnp.concatenate(pieces, axis=1).reshape(N, K, HW)
    patches = jnp.pad(patches, ((0, 0), (0, K_pad - K), (0, HW_pad - HW)))

    # weights flattened with the same (kh, kw, c_in) ordering, zero-padded
    w_flat = jnp.transpose(w_oihw, (0, 2, 3, 1)).reshape(C_out, K).astype(jnp.bfloat16)
    w_flat = jnp.pad(w_flat, ((0, C_out_p - C_out), (0, K_pad - K)))

    vmem_limit = _vmem_limit()

    # ---- pass 1: conv (K-tiled MXU matmul, f32 accumulate) + per-tile BN partial stats ----
    cost1 = pl.CostEstimate(
        flops=2 * N * HW_pad * C_out_p * K_pad,
        transcendentals=0,
        bytes_accessed=(N * K_pad * HW_pad * 2 + C_out_p * K_pad * 2
                        + N * C_out_p * HW_pad * 2 + N * num_m * C_out_p * 2 * 4))

    conv, stats = pl.pallas_call(
        _conv_stats_kernel,
        grid=(N, num_m, num_k),
        in_specs=[
            pl.BlockSpec((pl.Squeezed(), TK, TM), lambda n, m, k: (n, k, m)),
            pl.BlockSpec((C_out_p, TK), lambda n, m, k: (0, k)),
        ],
        out_specs=(
            pl.BlockSpec((pl.Squeezed(), C_out_p, TM), lambda n, m, k: (n, 0, m)),
            pl.BlockSpec((pl.Squeezed(), pl.Squeezed(), C_out_p, 2),
                         lambda n, m, k: (n, m, 0, 0)),
        ),
        out_shape=(
            jax.ShapeDtypeStruct((N, C_out_p, HW_pad), jnp.bfloat16),
            jax.ShapeDtypeStruct((N, num_m, C_out_p, 2), jnp.float32),
        ),
        scratch_shapes=[pltpu.VMEM((C_out_p, TM), jnp.float32)],
        compiler_params=pltpu.CompilerParams(
            dimension_semantics=("parallel", "parallel", "arbitrary"),
            vmem_limit_bytes=vmem_limit),
        cost_estimate=cost1,
    )(patches, w_flat)

    # ---- finalize BatchNorm2d train-mode statistics (tiny reduction, plain XLA) ----
    totals = stats.sum(axis=(0, 1))                      # (C_out_p, 2)
    cnt = jnp.float32(N * HW)                            # padded columns are zero: excluded
    mean = totals[:, 0] / cnt
    var = jnp.maximum(totals[:, 1] / cnt - mean * mean, 0.0)   # biased, clamped >= 0
    gamma_p = jnp.pad(gamma.astype(jnp.float32), (0, C_out_p - C_out))
    beta_p = jnp.pad(beta.astype(jnp.float32), (0, C_out_p - C_out))
    scale = gamma_p * lax.rsqrt(var + eps)
    shift = beta_p - mean * scale

    # ---- pass 2: normalize + ReLU (reads bf16 intermediate, writes f32 output) ----
    cost2 = pl.CostEstimate(
        flops=3 * N * C_out_p * HW_pad,
        transcendentals=0,
        bytes_accessed=N * C_out_p * HW_pad * (2 + 4))

    out = pl.pallas_call(
        _bn_relu_kernel,
        grid=(N, num_m),
        in_specs=[
            pl.BlockSpec((pl.Squeezed(), C_out_p, TM), lambda n, m: (n, 0, m)),
            pl.BlockSpec((C_out_p, 1), lambda n, m: (0, 0)),
            pl.BlockSpec((C_out_p, 1), lambda n, m: (0, 0)),
        ],
        out_specs=pl.BlockSpec((pl.Squeezed(), C_out_p, TM), lambda n, m: (n, 0, m)),
        out_shape=jax.ShapeDtypeStruct((N, C_out_p, HW_pad), jnp.float32),
        compiler_params=pltpu.CompilerParams(
            dimension_semantics=("parallel", "parallel"),
            vmem_limit_bytes=vmem_limit),
        cost_estimate=cost2,
    )(conv, scale.reshape(C_out_p, 1), shift.reshape(C_out_p, 1))

    # Free when no padding was needed (C_out_p == C_out and HW_pad == HW).
    return out[:, :C_out, :HW].reshape(N, C_out, H_out, W_out)


# --------------------------------------------------------------------------------------
# Reference and self-test
# --------------------------------------------------------------------------------------
def _reference(x, w, b, gamma, beta, *, stride, pad, eps=1e-5):
    conv = lax.conv_general_dilated(
        x, w, (stride, stride), [(pad, pad), (pad, pad)],
        dimension_numbers=("NCHW", "OIHW", "NCHW"),
        precision=lax.Precision.HIGHEST) + b.reshape(1, -1, 1, 1)
    mean = conv.mean(axis=(0, 2, 3), keepdims=True)
    var = ((conv - mean) ** 2).mean(axis=(0, 2, 3), keepdims=True)
    y = (conv - mean) * gamma.reshape(1, -1, 1, 1) / jnp.sqrt(var + eps) \
        + beta.reshape(1, -1, 1, 1)
    return jnp.maximum(y, 0.0)


if __name__ == "__main__":
    # ConvBNReLU(ch_in=4, ch_out=8, kernel_size=3, stride=1, pad=1)
    N, C_in, H, W = 2, 4, 16, 16
    C_out, KH, KW = 8, 3, 3
    stride, pad = 1, 1

    key = jax.random.PRNGKey(0)
    kx, kw_, kb, kg, kbeta = jax.random.split(key, 5)
    x = jax.random.normal(kx, (N, C_in, H, W), jnp.float32)
    w = jax.random.normal(kw_, (C_out, C_in, KH, KW), jnp.float32) * 0.1
    b = jax.random.normal(kb, (C_out,), jnp.float32) * 0.1
    gamma = 1.0 + 0.1 * jax.random.normal(kg, (C_out,), jnp.float32)
    beta = 0.1 * jax.random.normal(kbeta, (C_out,), jnp.float32)

    out = conv_bn_relu(x, w, b, gamma, beta, stride=stride, pad=pad)
    out = jax.block_until_ready(out)
    assert out.shape == (N, C_out, H, W)

    # Tight check: reference fed the same bf16-rounded conv inputs the kernel uses.
    # (The kernel additionally stores the conv intermediate in bf16, hence 2e-2.)
    xq = x.astype(jnp.bfloat16).astype(jnp.float32)
    wq = w.astype(jnp.bfloat16).astype(jnp.float32)
    ref_tight = _reference(xq, wq, b, gamma, beta, stride=stride, pad=pad)
    err_tight = float(jnp.max(jnp.abs(out - ref_tight)))
    assert jnp.allclose(out, ref_tight, atol=2e-2, rtol=2e-2), err_tight

    # Sanity check vs full-f32 module semantics (bf16 MXU inputs => looser tolerance).
    ref = _reference(x, w, b, gamma, beta, stride=stride, pad=pad)
    err = float(jnp.max(jnp.abs(out - ref)))
    assert jnp.allclose(out, ref, atol=1e-1, rtol=1e-1), err

    print("KERNEL_OK")
</pallas_src>

<mosaic_0001>
module attributes {stable_mosaic.version = 11 : i64} {
  func.func @_conv_stats_kernel(%arg0: i32, %arg1: i32, %arg2: i32, %arg3: memref<1x36x256xbf16, #tpu.memory_space<vmem>>, %arg4: memref<8x36xbf16, #tpu.memory_space<vmem>>, %arg5: memref<1x8x256xbf16, #tpu.memory_space<vmem>>, %arg6: memref<1x1x8x2xf32, #tpu.memory_space<vmem>>, %arg7: memref<8x256xf32, #tpu.memory_space<vmem>>) attributes {dimension_semantics = [#tpu.dimension_semantics<parallel>, #tpu.dimension_semantics<parallel>, #tpu.dimension_semantics<arbitrary>], iteration_bounds = array<i64: 2, 1, 1>, scalar_prefetch = 0 : i64, scratch_operands = 1 : i64, tpu.core_type = #tpu.core_type<tc>, window_params = [{transform_indices = @transform_0, window_bounds = array<i64: 1, 36, 256>}, {transform_indices = @transform_1, window_bounds = array<i64: 8, 36>}, {transform_indices = @transform_2, window_bounds = array<i64: 1, 8, 256>}, {transform_indices = @transform_3, window_bounds = array<i64: 1, 1, 8, 2>}]} {
    %c0_i32 = arith.constant 0 : i32
    %0 = arith.cmpi eq, %arg2, %c0_i32 : i32
    %1 = arith.extui %0 : i1 to i32
    %c0_i32_0 = arith.constant 0 : i32
    %2 = arith.cmpi ne, %1, %c0_i32_0 : i32
    scf.if %2 {
      %cst_11 = arith.constant 0.000000e+00 : f32
      %13 = vector.broadcast %cst_11 : f32 to vector<8x256xf32>
      %c0_12 = arith.constant 0 : index
      %c0_13 = arith.constant 0 : index
      %14 = vector.load %arg7[%c0_12, %c0_13] : memref<8x256xf32, #tpu.memory_space<vmem>>, vector<8x256xf32>
      tpu.vector_store %arg7[%c0_12, %c0_13], %13 {strides = array<i32>} : memref<8x256xf32, #tpu.memory_space<vmem>>, vector<8x256xf32>,
    } else {
    }
    %c0 = arith.constant 0 : index
    %c0_1 = arith.constant 0 : index
    %3 = vector.load %arg7[%c0, %c0_1] : memref<8x256xf32, #tpu.memory_space<vmem>>, vector<8x256xf32>
    %c0_2 = arith.constant 0 : index
    %c0_3 = arith.constant 0 : index
    %4 = vector.load %arg4[%c0_2, %c0_3] : memref<8x36xbf16, #tpu.memory_space<vmem>>, vector<8x36xbf16>
    %c0_4 = arith.constant 0 : index
    %c0_5 = arith.constant 0 : index
    %c0_6 = arith.constant 0 : index
    %5 = vector.load %arg3[%c0_4, %c0_5, %c0_6] : memref<1x36x256xbf16, #tpu.memory_space<vmem>>, vector<1x36x256xbf16>
    %6 = vector.shape_cast %5 : vector<1x36x256xbf16> to vector<36x256xbf16>
    %cst = arith.constant dense<0.000000e+00> : vector<8x256xf32>
    %7 = tpu.matmul %4, %6, %cst {dimension_numbers = #tpu.dot_dimension_numbers<[1], [0], [0], [1], [0, 0, 1, 1], [], []>} : vector<8x36xbf16>, vector<36x256xbf16>, vector<8x256xf32> -> vector<8x256xf32>
    %8 = arith.addf %3, %7 : vector<8x256xf32>
    %c0_7 = arith.constant 0 : index
    %c0_8 = arith.constant 0 : index
    %9 = vector.load %arg7[%c0_7, %c0_8] : memref<8x256xf32, #tpu.memory_space<vmem>>, vector<8x256xf32>
    tpu.vector_store %arg7[%c0_7, %c0_8], %8 {strides = array<i32>} : memref<8x256xf32, #tpu.memory_space<vmem>>, vector<8x256xf32>,
    %c0_i32_9 = arith.constant 0 : i32
    %10 = arith.cmpi eq, %arg2, %c0_i32_9 : i32
    %11 = arith.extui %10 : i1 to i32
    %c0_i32_10 = arith.constant 0 : i32
    %12 = arith.cmpi ne, %11, %c0_i32_10 : i32
    scf.if %12 {
      %c0_11 = arith.constant 0 : index
      %c0_12 = arith.constant 0 : index
      %13 = vector.load %arg7[%c0_11, %c0_12] : memref<8x256xf32, #tpu.memory_space<vmem>>, vector<8x256xf32>
      %14 = arith.truncf %13 : vector<8x256xf32> to vector<8x256xbf16>
      %c0_13 = arith.constant 0 : index
      %c0_14 = arith.constant 0 : index
      %c0_15 = arith.constant 0 : index
      %15 = vector.load %arg5[%c0_13, %c0_14, %c0_15] : memref<1x8x256xbf16, #tpu.memory_space<vmem>>, vector<1x8x256xbf16>
      %16 = vector.shape_cast %15 : vector<1x8x256xbf16> to vector<8x256xbf16>
      %17 = vector.shape_cast %14 : vector<8x256xbf16> to vector<1x8x256xbf16>
      tpu.vector_store %arg5[%c0_13, %c0_14, %c0_15], %17 {strides = array<i32>} : memref<1x8x256xbf16, #tpu.memory_space<vmem>>, vector<1x8x256xbf16>,
      %cst_16 = arith.constant dense<0.000000e+00> : vector<8xf32>
      %18 = vector.multi_reduction <add>, %13, %cst_16 [1] : vector<8x256xf32> to vector<8xf32>
      %19 = vector.shape_cast %18 : vector<8xf32> to vector<8x1xf32>
      %c0_17 = arith.constant 0 : index
      %c0_18 = arith.constant 0 : index
      %c0_19 = arith.constant 0 : index
      %c0_20 = arith.constant 0 : index
      %20 = vector.load %arg6[%c0_17, %c0_18, %c0_19, %c0_20] : memref<1x1x8x2xf32, #tpu.memory_space<vmem>>, vector<1x1x8x1xf32>
      %21 = vector.shape_cast %20 : vector<1x1x8x1xf32> to vector<8x1xf32>
      %22 = vector.shape_cast %19 : vector<8x1xf32> to vector<1x1x8x1xf32>
      tpu.vector_store %arg6[%c0_17, %c0_18, %c0_19, %c0_20], %22 {strides = array<i32>} : memref<1x1x8x2xf32, #tpu.memory_space<vmem>>, vector<1x1x8x1xf32>,
      %23 = arith.mulf %13, %13 : vector<8x256xf32>
      %cst_21 = arith.constant dense<0.000000e+00> : vector<8xf32>
      %24 = vector.multi_reduction <add>, %23, %cst_21 [1] : vector<8x256xf32> to vector<8xf32>
      %25 = vector.shape_cast %24 : vector<8xf32> to vector<8x1xf32>
      %c0_22 = arith.constant 0 : index
      %c0_23 = arith.constant 0 : index
      %c0_24 = arith.constant 0 : index
      %c1 = arith.constant 1 : index
      %26 = vector.load %arg6[%c0_22, %c0_23, %c0_24, %c1] : memref<1x1x8x2xf32, #tpu.memory_space<vmem>>, vector<1x1x8x1xf32>
      %27 = vector.shape_cast %26 : vector<1x1x8x1xf32> to vector<8x1xf32>
      %28 = vector.shape_cast %25 : vector<8x1xf32> to vector<1x1x8x1xf32>
      tpu.vector_store %arg6[%c0_22, %c0_23, %c0_24, %c1], %28 {strides = array<i32>} : memref<1x1x8x2xf32, #tpu.memory_space<vmem>>, vector<1x1x8x1xf32>,
    } else {
    }
    return
  }
  func.func @transform_0(%arg0: i32, %arg1: i32, %arg2: i32) -> (i32, i32, i32) {
    %c0_i32 = arith.constant 0 : i32
    return %arg0, %arg2, %arg1 : i32, i32, i32
  }
  func.func @transform_1(%arg0: i32, %arg1: i32, %arg2: i32) -> (i32, i32) {
    %c0_i32 = arith.constant 0 : i32
    %c0_i32_0 = arith.constant 0 : i32
    return %c0_i32, %arg2 : i32, i32
  }
  func.func @transform_2(%arg0: i32, %arg1: i32, %arg2: i32) -> (i32, i32, i32) {
    %c0_i32 = arith.constant 0 : i32
    %c0_i32_0 = arith.constant 0 : i32
    return %arg0, %c0_i32, %arg1 : i32, i32, i32
  }
  func.func @transform_3(%arg0: i32, %arg1: i32, %arg2: i32) -> (i32, i32, i32, i32) {
    %c0_i32 = arith.constant 0 : i32
    %c0_i32_0 = arith.constant 0 : i32
    %c0_i32_1 = arith.constant 0 : i32
    return %arg0, %arg1, %c0_i32, %c0_i32_0 : i32, i32, i32, i32
  }
}

module attributes {stable_mosaic.version = 11 : i64} {
  func.func @_bn_relu_kernel(%arg0: i32, %arg1: i32, %arg2: memref<1x8x256xbf16, #tpu.memory_space<vmem>>, %arg3: memref<8x1xf32, #tpu.memory_space<vmem>>, %arg4: memref<8x1xf32, #tpu.memory_space<vmem>>, %arg5: memref<1x8x256xf32, #tpu.memory_space<vmem>>) attributes {dimension_semantics = [#tpu.dimension_semantics<parallel>, #tpu.dimension_semantics<parallel>], iteration_bounds = array<i64: 2, 1>, scalar_prefetch = 0 : i64, scratch_operands = 0 : i64, tpu.core_type = #tpu.core_type<tc>, window_params = [{transform_indices = @transform_0, window_bounds = array<i64: 1, 8, 256>}, {pipeline_mode = #tpu.pipeline_mode<synchronous>, transform_indices = @transform_1, window_bounds = array<i64: 8, 1>}, {pipeline_mode = #tpu.pipeline_mode<synchronous>, transform_indices = @transform_2, window_bounds = array<i64: 8, 1>}, {transform_indices = @transform_3, window_bounds = array<i64: 1, 8, 256>}]} {
    %c0 = arith.constant 0 : index
    %c0_0 = arith.constant 0 : index
    %c0_1 = arith.constant 0 : index
    %0 = vector.load %arg2[%c0, %c0_0, %c0_1] : memref<1x8x256xbf16, #tpu.memory_space<vmem>>, vector<1x8x256xbf16>
    %1 = vector.shape_cast %0 : vector<1x8x256xbf16> to vector<8x256xbf16>
    %2 = arith.extf %1 : vector<8x256xbf16> to vector<8x256xf32>
    %c0_2 = arith.constant 0 : index
    %c0_3 = arith.constant 0 : index
    %3 = vector.load %arg3[%c0_2, %c0_3] : memref<8x1xf32, #tpu.memory_space<vmem>>, vector<8x1xf32>
    %4 = vector.broadcast %3 : vector<8x1xf32> to vector<8x256xf32>
    %5 = arith.mulf %2, %4 : vector<8x256xf32>
    %c0_4 = arith.constant 0 : index
    %c0_5 = arith.constant 0 : index
    %6 = vector.load %arg4[%c0_4, %c0_5] : memref<8x1xf32, #tpu.memory_space<vmem>>, vector<8x1xf32>
    %7 = vector.broadcast %6 : vector<8x1xf32> to vector<8x256xf32>
    %8 = arith.addf %5, %7 : vector<8x256xf32>
    %cst = arith.constant 0.000000e+00 : f32
    %9 = vector.broadcast %cst : f32 to vector<8x256xf32>
    %10 = arith.maximumf %8, %9 : vector<8x256xf32>
    %c0_6 = arith.constant 0 : index
    %c0_7 = arith.constant 0 : index
    %c0_8 = arith.constant 0 : index
    %11 = vector.load %arg5[%c0_6, %c0_7, %c0_8] : memref<1x8x256xf32, #tpu.memory_space<vmem>>, vector<1x8x256xf32>
    %12 = vector.shape_cast %11 : vector<1x8x256xf32> to vector<8x256xf32>
    %13 = vector.shape_cast %10 : vector<8x256xf32> to vector<1x8x256xf32>
    tpu.vector_store %arg5[%c0_6, %c0_7, %c0_8], %13 {strides = array<i32>} : memref<1x8x256xf32, #tpu.memory_space<vmem>>, vector<1x8x256xf32>,
    return
  }
  func.func @transform_0(%arg0: i32, %arg1: i32) -> (i32, i32, i32) {
    %c0_i32 = arith.constant 0 : i32
    %c0_i32_0 = arith.constant 0 : i32
    return %arg0, %c0_i32, %arg1 : i32, i32, i32
  }
  func.func @transform_1(%arg0: i32, %arg1: i32) -> (i32, i32) {
    %c0_i32 = arith.constant 0 : i32
    %c0_i32_0 = arith.constant 0 : i32
    %c0_i32_1 = arith.constant 0 : i32
    return %c0_i32, %c0_i32_0 : i32, i32
  }
  func.func @transform_2(%arg0: i32, %arg1: i32) -> (i32, i32) {
    %c0_i32 = arith.constant 0 : i32
    %c0_i32_0 = arith.constant 0 : i32
    %c0_i32_1 = arith.constant 0 : i32
    return %c0_i32, %c0_i32_0 : i32, i32
  }
  func.func @transform_3(%arg0: i32, %arg1: i32) -> (i32, i32, i32) {
    %c0_i32 = arith.constant 0 : i32
    %c0_i32_0 = arith.constant 0 : i32
    return %arg0, %c0_i32, %arg1 : i32, i32, i32
  }
}

</mosaic_0001>

<bundles_post_ra>
// kernel: conv_bn_relu.2
= control target key start
LH: loop header
LB: loop body
LE: loop exit
PB: predicated region body
PF: predicated region fallthrough
CT: control target
= control target key end

     0   :  { %s648_s12 = smov 0   ;;  %s650_s13 = smov 0   ;;  %s691_s0 = inlined_call_operand.vmem [shape: bf16[2,36,256], index: 0, kind: input, shape index: {}]   ;;  %s692_s1 = inlined_call_operand.vmem [shape: bf16[8,36], index: 1, kind: input, shape index: {}]   ;;  %s693_s2 = inlined_call_operand.vmem [shape: bf16[2,8,256], index: 2, kind: output, shape index: {0}]   ;;  %s694_s3 = inlined_call_operand.vmem [shape: f32[2,1,8,2], index: 3, kind: output, shape index: {1}]  }
   0x1   :  { %s652_s14 = smov 0  }
   0x2 LB: > { %s33_s15 = sadd.s32 1, %s621_s13  ;;  %p551_p0 = scmp.ge.s32.totalorder %s625_s14, 1  ;;  %s625_s14 = sphi %s652_s14, %s14_s14   ;;  %s621_s13 = sphi %s650_s13, %s696_s13   ;;  %s617_s12 = sphi %s648_s12, %s695_s12  }
   0x3   : > { %p35_p1 = scmp.ge.s32.totalorder %s33_s15, 2  ;;  %p187_p2 = scmp.lt.s32.totalorder %s625_s14, 3 }
   0x5   : > { %s698_s15 = smov (%p35_p1, %s33_s15), 0  ;;  %p188_p3 = pnand %p551_p0, %p187_p2 }
   0x6   : > { %p237_p4 = scmp.lt.s32.totalorder (!%p188_p3), %s617_s12, 1  ;;  %v627_v0 = vmov (!%p188_p3), 0   ;;  %vm316_vm0 = vcmask (!%p188_p3), 1041408   ;;  %v281_v9 = vld [vmem:[%s692_s1] sm:$0xf] (!%p188_p3)  ;;  %vm312_vm1 = vcmask (!%p188_p3), 293888  }
   0x7   : > { %191 = sbr.rel (%p188_p3) target bundleno = 393 (0x189), region = 28  ;;  %355 = vmatprep.mubr.bf16.mxu0 (!%p188_p3), %v627_v0  ;;  %vm385_vm2 = vcmask (!%p188_p3), 7168   ;;  %vm392_vm3 = vcmask (!%p188_p3), 15368  }
   0xe   : > { %s700_s12 = smov (!%p237_p4, %s617_s12), 1 }
   0xf   : > { %s569_s16 = smul.u32 40, %s700_s12  ;;  %s567_s22 = sshll.u32 %s700_s12, 3 }
  0x10   : > { %s263_s25 = scalar_lea.vmem %s693_s2, %s567_s22  ;;  %s271_s28 = scalar_lea.vmem %s694_s3, %s567_s22 }
  0x11   : > { %s248_s19 = scalar_lea.vmem %s691_s0, %s569_s16 }
  0x12   : > { %v595_v1 = vld [vmem:[%s248_s19 + $0x4] ss:$8 sps:$4 sm:$0xff]   ;;  %v597_v2 = vld [vmem:[%s248_s19] ss:$8 sps:$4 sm:$0xff]   ;;  %v598_v3 = vld [vmem:[%s248_s19 + $0x14] ss:$8 sps:$4 sm:$0xff]  }
  0x13   : > { %323 = vmatprep.subr.bf16.mxu0 %v595_v1  ;;  %v286_v4 = vld [vmem:[%s248_s19 + $0x20] sm:$0x33]  ;;  %v600_v5 = vld [vmem:[%s248_s19 + $0x10] ss:$8 sps:$4 sm:$0xff]  }
  0x14   : > { %324 = vmatpush1.bf16.msra.mxu0 %v597_v2  ;;  %v561_v6 = vcombine.high %v286_v4, %v286_v4  ;;  %v560_v7 = vcombine.low %v286_v4, %v286_v4 }
  0x15   : > { %325 = vmatprep.subr.bf16.mxu0 %v598_v3 }
  0x16   : > { %v318_v8 = vsel %vm316_vm0, %v560_v7, 0 }
  0x18   : > { %326 = vmatpush1.bf16.msra.mxu0 %v600_v5 }
  0x19   : > { %562 = vmatprep.subr.msk.bf16.mxu0 %vm316_vm0, %v561_v6 }
  0x1c   : > { %328 = vmatpush1.bf16.msra.mxu0 %v318_v8 }
  0x1f   : > { %563 = vmatmul.mubr.msk.bf16.vlgmr.msra.gmra.mrb[0].mxu0 %vm312_vm1, %v281_v9 }
  0xf2   : > { %v357_v10 = vpop.f32.mrb[0].mxu0 }
  0xf3   : > { %v359_v11 = vpop.f32.mrb[1].mxu0  ;;  %v387_v12 = vmul.f32 %v357_v10, %v357_v10 }
  0xf4   : > { %v568_v13 = vpack.c.bf16 %v359_v11, %v357_v10  ;;  %v361_v14 = vpop.f32.mrb[2].mxu0  ;;  %v382_v15 = vadd.f32 %v359_v11, %v357_v10  ;;  %v388_v16 = vmul.f32 %v359_v11, %v359_v11 }
  0xf5   : > { %v362_v17 = vpop.f32.mrb[3].mxu0 }
  0xf6   : > { %383 = vadd.xlane.f32.xlu0 %v382_v15  ;;  %v389_v18 = vadd.f32 %v388_v16, %v387_v12  ;;  %381 = vst [vmem:[%s263_s25] sm:$0xff] %v568_v13 }
  0xfa   : > { %390 = vadd.xlane.f32.xlu0 %v389_v18 }
 0x183   : > { %v384_v19 = vpop.xlane.xlu0 %383 }
 0x184   : > { %386 = vst.msk [vmem:[%s271_s28] sm:$0xff] %vm385_vm2, %v384_v19 }
 0x187   : > { %v391_v20 = vpop.xlane.xlu0 %390 }
 0x188   : > { %393 = vst.msk [vmem:[%s271_s28] sm:$0xff] %vm392_vm3, %v391_v20 }
 0x189 PF: > { %s14_s14 = sadd.s32 1, %s625_s14   ;;  %s695_s12 = smov %s621_s13 }
 0x18a   : > { %p11_p5 = scmp.ge.s32.totalorder %s14_s14, 4   ;;  %s696_s13 = smov %s698_s15 }
 0x18c   :  { %13 = sbr.rel (!%p11_p5) target bundleno = 2 (0x2), region = 81 }

// kernel: conv_bn_relu.3
= control target key start
LH: loop header
LB: loop body
LE: loop exit
PB: predicated region body
PF: predicated region fallthrough
CT: control target
= control target key end

     0   :  { %s404_s12 = smov 0   ;;  %s406_s13 = smov 0   ;;  %s443_s0 = inlined_call_operand.vmem [shape: bf16[2,8,256], index: 0, kind: input, shape index: {}]   ;;  %s444_s1 = inlined_call_operand.vmem [shape: f32[8,1], index: 1, kind: input, shape index: {}]   ;;  %s445_s2 = inlined_call_operand.vmem [shape: f32[8,1], index: 2, kind: input, shape index: {}]   ;;  %s446_s3 = inlined_call_operand.vmem [shape: f32[2,8,256], index: 3, kind: output, shape index: {}]  }
   0x1   :  { %s408_s14 = smov 0  }
   0x2 LB: > { %s25_s15 = sadd.s32 1, %s377_s13  ;;  %p324_p0 = scmp.ge.s32.totalorder %s381_s14, 1  ;;  %s381_s14 = sphi %s408_s14, %s13_s14   ;;  %s377_s13 = sphi %s406_s13, %s448_s13   ;;  %s373_s12 = sphi %s404_s12, %s447_s12  }
   0x3   : > { %p27_p1 = scmp.ge.s32.totalorder %s25_s15, 2  ;;  %p158_p2 = scmp.lt.s32.totalorder %s381_s14, 3 }
   0x5   : > { %s450_s15 = smov (%p27_p1, %s25_s15), 0  ;;  %p159_p3 = pnand %p324_p0, %p158_p2 }
   0x6   : > { %v213_v0 = vld [vmem:[%s444_s1] sm:$0xff] (!%p159_p3)  ;;  %v383_v1 = vmov (!%p159_p3), 0   ;;  %p191_p4 = scmp.lt.s32.totalorder (!%p159_p3), %s373_s12, 1 }
   0x7   : > { %162 = sbr.rel (%p159_p3) target bundleno = 145 (0x91), region = 32  ;;  %358 = vset.pattern.permute.xlu0 (!%p159_p3), %v383_v1  ;;  %v221_v2 = vld [vmem:[%s445_s2] sm:$0xff] (!%p159_p3) }
   0x8   : > { %216 = vperm.xlu0 (!%p159_p3), %358, %v213_v0  }
   0xc   : > { %224 = vperm.xlu0 (!%p159_p3), %358, %v221_v2  }
   0xe   : > { %s452_s12 = smov (!%p191_p4, %s373_s12), 1 }
   0xf   : > { %s331_s20 = sshll.u32 %s452_s12, 3  ;;  %s332_s24 = sshll.u32 %s452_s12, 4 }
  0x10   : > { %s198_s23 = scalar_lea.vmem %s443_s0, %s331_s20  ;;  %s208_s27 = scalar_lea.vmem %s446_s3, %s332_s24 }
  0x11   : > { %v210_v3 = vld [vmem:[%s198_s23] sm:$0xff] }
  0x12   : > { %v211_v4 = vunpack.c.l.bf16 %v210_v3  ;;  %v212_v5 = vunpack.c.h.bf16 %v210_v3 }
  0x87   : > { %v217_v6 = vpop.permute.xlu0 %216 }
  0x88   : > { %v219_v7 = vmul.f32 %v217_v6, %v211_v4  ;;  %v220_v8 = vmul.f32 %v217_v6, %v212_v5 }
  0x8b   : > { %v225_v9 = vpop.permute.xlu0 %224 }
  0x8c   : > { %v227_v10 = vadd.f32 %v225_v9, %v219_v7  ;;  %v228_v11 = vadd.f32 %v225_v9, %v220_v8 }
  0x8e   : > { %v229_v12 = vmax.f32 %v227_v10, 0.0  ;;  %v230_v13 = vmax.f32 %v228_v11, 0.0 }
  0x90   : > { %231 = vst [vmem:[%s208_s27] sm:$0xff] %v229_v12  ;;  %232 = vst [vmem:[%s208_s27 + $0x8] sm:$0xff] %v230_v13 }
  0x91 PF: > { %s13_s14 = sadd.s32 1, %s381_s14   ;;  %s447_s12 = smov %s377_s13 }
  0x92   : > { %p10_p5 = scmp.ge.s32.totalorder %s13_s14, 4   ;;  %s448_s13 = smov %s450_s15 }
  0x94   :  { %12 = sbr.rel (!%p10_p5) target bundleno = 2 (0x2), region = 62 }

</bundles_post_ra>
